<compile_context>
chip_gen: v7x
topology: tpu7x:2x2x1
jax: 0.10.0
libtpu: 0.0.40
codegen_flags: <defaults>
</compile_context>

<pallas_src>
import functools

import jax
import jax.numpy as jnp
from jax.experimental import pallas as pl
from jax.experimental.pallas import tpu as pltpu


def _round_up(x, m):
    return ((x + m - 1) // m) * m


# Maclaurin coefficients of sigmoid (odd part), used for the OUTER sigmoid whose argument
# is itself a sigmoid output and hence lies in (0, 1).  Max abs error on [0, 1] ~2.2e-6.
_SIG_C1 = 0.25
_SIG_C3 = -1.0 / 48.0
_SIG_C5 = 1.0 / 480.0
_SIG_C7 = -17.0 / 80640.0
_SIG_C9 = 31.0 / 1451520.0


def _fermi_dirac_kernel(xs_ref, xt_ref, out_ref, *, r, inv_t):
    # xs_ref: (TM, D)  rows of x with the time coordinate negated
    #         (so a plain matmul against x.T gives the Lorentz inner product).
    # xt_ref: (D, TN)  x transposed (transpose done host-side).
    # out_ref: (TM, TN) tile of adj_pred.
    gram = jnp.dot(
        xs_ref[...], xt_ref[...],
        precision=jax.lax.Precision.HIGHEST,      # full-f32 MXU passes; the Gram diagonal
        preferred_element_type=jnp.float32,       # (~ -1) feeds arccosh near z = 1
    )
    z = jnp.maximum(-gram, 1.0 + 1e-7)            # arccosh domain clamp (as in manifold code)
    zm1 = z - 1.0
    dist = jnp.log1p(zm1 + jnp.sqrt(zm1 * (z + 1.0)))   # arccosh(z), stable near z = 1
    dist2 = dist * dist                                  # manifold.dist2
    u = (r - dist2) * inv_t
    probs = 0.5 * (1.0 + jnp.tanh(0.5 * u))              # inner sigmoid (unbounded arg -> EUP tanh)
    # Outer sigmoid: bounded argument in (0, 1) -> polynomial on the VALU (saves 1 EUP op/elem).
    p2 = probs * probs
    out_ref[...] = 0.5 + probs * (
        _SIG_C1 + p2 * (_SIG_C3 + p2 * (_SIG_C5 + p2 * (_SIG_C7 + p2 * _SIG_C9))))


def fermi_dirac_decoder(x, r=2.0, t=1.0, *, tm=512, tn=2048):
    """x: (N, D) float32 points on the Lorentz hyperboloid (k=1). Returns (N, N) adj_pred."""
    N, D = x.shape

    signs = jnp.concatenate([-jnp.ones((1,), x.dtype), jnp.ones((D - 1,), x.dtype)])
    xs = x * signs          # negate time-like coord -> plain matmul == Lorentz inner product
    xT = x.T                # (D, N); transpose stays host-side

    # Tile sizing: lane-dense TN (multiple of 128), TM multiple of 8; guarantee >= 2 row
    # blocks so both v7x TensorCores get work even for modest N.
    tn = min(tn, _round_up(N, 128))
    tm = min(tm, max(8, _round_up(pl.cdiv(N, 2), 8)))
    grid = (pl.cdiv(N, tm), pl.cdiv(N, tn))

    # Pad the small (N x D) inputs so every block read is in-bounds.  The (N, N) output is
    # emitted at its exact shape (masked stores only on ragged edge tiles, no post-slice).
    n_rows = grid[0] * tm
    n_cols = grid[1] * tn
    if n_rows != N:
        xs = jnp.pad(xs, ((0, n_rows - N), (0, 0)))   # zero rows -> gram 0 -> clamped, no NaN
    if n_cols != N:
        xT = jnp.pad(xT, ((0, 0), (0, n_cols - N)))

    # VMEM budget: double-buffered inputs + double-buffered output + materialized Gram /
    # elementwise-chain temps, plus headroom; capped well under v7x's 64 MiB/TC.
    need = 2 * 4 * (tm * D + D * tn) + 2 * 4 * (tm * tn) + 2 * 4 * (tm * tn)
    vmem_limit = min(max(need + (4 << 20), 32 << 20), 48 << 20)

    kernel = functools.partial(_fermi_dirac_kernel, r=float(r), inv_t=1.0 / float(t))
    return pl.pallas_call(
        kernel,
        out_shape=jax.ShapeDtypeStruct((N, N), jnp.float32),
        grid=grid,
        in_specs=[
            pl.BlockSpec((tm, D), lambda i, j: (i, 0)),
            pl.BlockSpec((D, tn), lambda i, j: (0, j)),
        ],
        out_specs=pl.BlockSpec((tm, tn), lambda i, j: (i, j)),
        compiler_params=pltpu.CompilerParams(
            dimension_semantics=("parallel", "parallel"),
            vmem_limit_bytes=vmem_limit,
        ),
    )(xs, xT)


def _reference(x, r=2.0, t=1.0):
    # Pure-JAX reference of the same math (mirrors the PyTorch loop).
    x0 = x[:, :1]
    xr = x[:, 1:]
    gram = -(x0 @ x0.T) + xr @ xr.T
    z = jnp.maximum(-gram, 1.0 + 1e-7)
    dist = jnp.arccosh(z)
    dist2 = dist * dist
    probs = jax.nn.sigmoid((r - dist2) / t)
    return jax.nn.sigmoid(probs)


def _make_points(key, n, d):
    # Points on the hyperboloid (k=1): sample spatial part, x0 = sqrt(1 + ||x_rest||^2).
    x_rest = 0.5 * jax.random.normal(key, (n, d - 1), dtype=jnp.float32)
    x0 = jnp.sqrt(1.0 + jnp.sum(x_rest * x_rest, axis=-1, keepdims=True))
    return jnp.concatenate([x0, x_rest], axis=-1)


if __name__ == "__main__":
    key = jax.random.PRNGKey(0)
    k1, k2 = jax.random.split(key)
    r, t = 2.0, 1.0

    # Small case (matches the module's typical tiny-N use).
    N, D = 16, 8
    x = _make_points(k1, N, D)
    adj_pred = jax.block_until_ready(fermi_dirac_decoder(x, r=r, t=t))
    ref = _reference(x, r=r, t=t)
    assert adj_pred.shape == (N, N)
    assert jnp.allclose(adj_pred, ref, atol=1e-5, rtol=1e-5)

    # Non-multiple-of-128 case to exercise ragged edge tiles + input padding.
    N2 = 200
    x2 = _make_points(k2, N2, D)
    adj2 = jax.block_until_ready(fermi_dirac_decoder(x2, r=r, t=t))
    ref2 = _reference(x2, r=r, t=t)
    assert adj2.shape == (N2, N2)
    assert jnp.allclose(adj2, ref2, atol=1e-5, rtol=1e-5)

    print("KERNEL_OK")
</pallas_src>

<mosaic_0001>
module attributes {stable_mosaic.version = 11 : i64} {
  func.func @_fermi_dirac_kernel(%arg0: i32, %arg1: i32, %arg2: memref<8x8xf32, #tpu.memory_space<vmem>>, %arg3: memref<8x128xf32, #tpu.memory_space<vmem>>, %arg4: memref<8x128xf32, #tpu.memory_space<vmem>>) attributes {dimension_semantics = [#tpu.dimension_semantics<parallel>, #tpu.dimension_semantics<parallel>], iteration_bounds = array<i64: 2, 1>, scalar_prefetch = 0 : i64, scratch_operands = 0 : i64, tpu.core_type = #tpu.core_type<tc>, window_params = [{transform_indices = @transform_0, window_bounds = array<i64: 8, 8>}, {transform_indices = @transform_1, window_bounds = array<i64: 8, 128>}, {transform_indices = @transform_2, window_bounds = array<i64: 8, 128>}]} {
    %c0 = arith.constant 0 : index
    %c0_0 = arith.constant 0 : index
    %0 = vector.load %arg2[%c0, %c0_0] : memref<8x8xf32, #tpu.memory_space<vmem>>, vector<8x8xf32>
    %c0_1 = arith.constant 0 : index
    %c0_2 = arith.constant 0 : index
    %1 = vector.load %arg3[%c0_1, %c0_2] : memref<8x128xf32, #tpu.memory_space<vmem>>, vector<8x128xf32>
    %cst = arith.constant dense<0.000000e+00> : vector<8x128xf32>
    %2 = tpu.matmul %0, %1, %cst {dimension_numbers = #tpu.dot_dimension_numbers<[1], [0], [0], [1], [0, 0, 1, 1], [], []>, precision = #tpu.contract_precision<fp32>} : vector<8x8xf32>, vector<8x128xf32>, vector<8x128xf32> -> vector<8x128xf32>
    %cst_3 = arith.constant 0.000000e+00 : f32
    %3 = vector.broadcast %cst_3 : f32 to vector<8x128xf32>
    %4 = arith.subf %3, %2 : vector<8x128xf32>
    %cst_4 = arith.constant 1.00000012 : f32
    %5 = vector.broadcast %cst_4 : f32 to vector<8x128xf32>
    %6 = arith.maximumf %4, %5 : vector<8x128xf32>
    %cst_5 = arith.constant 1.000000e+00 : f32
    %7 = vector.broadcast %cst_5 : f32 to vector<8x128xf32>
    %8 = arith.subf %6, %7 : vector<8x128xf32>
    %cst_6 = arith.constant 1.000000e+00 : f32
    %9 = vector.broadcast %cst_6 : f32 to vector<8x128xf32>
    %10 = arith.addf %6, %9 : vector<8x128xf32>
    %11 = arith.mulf %8, %10 : vector<8x128xf32>
    %12 = math.sqrt %11 : vector<8x128xf32>
    %13 = arith.addf %8, %12 : vector<8x128xf32>
    %14 = math.log1p %13 : vector<8x128xf32>
    %15 = arith.mulf %14, %14 : vector<8x128xf32>
    %cst_7 = arith.constant 2.000000e+00 : f32
    %16 = vector.broadcast %cst_7 : f32 to vector<8x128xf32>
    %17 = arith.subf %16, %15 : vector<8x128xf32>
    %cst_8 = arith.constant 1.000000e+00 : f32
    %18 = vector.broadcast %cst_8 : f32 to vector<8x128xf32>
    %19 = arith.mulf %17, %18 : vector<8x128xf32>
    %cst_9 = arith.constant 5.000000e-01 : f32
    %20 = vector.broadcast %cst_9 : f32 to vector<8x128xf32>
    %21 = arith.mulf %20, %19 : vector<8x128xf32>
    %22 = math.tanh %21 : vector<8x128xf32>
    %cst_10 = arith.constant 1.000000e+00 : f32
    %23 = vector.broadcast %cst_10 : f32 to vector<8x128xf32>
    %24 = arith.addf %23, %22 : vector<8x128xf32>
    %cst_11 = arith.constant 5.000000e-01 : f32
    %25 = vector.broadcast %cst_11 : f32 to vector<8x128xf32>
    %26 = arith.mulf %25, %24 : vector<8x128xf32>
    %27 = arith.mulf %26, %26 : vector<8x128xf32>
    %cst_12 = arith.constant 2.13569219E-5 : f32
    %28 = vector.broadcast %cst_12 : f32 to vector<8x128xf32>
    %29 = arith.mulf %27, %28 : vector<8x128xf32>
    %cst_13 = arith.constant -2.10813494E-4 : f32
    %30 = vector.broadcast %cst_13 : f32 to vector<8x128xf32>
    %31 = arith.addf %30, %29 : vector<8x128xf32>
    %32 = arith.mulf %27, %31 : vector<8x128xf32>
    %cst_14 = arith.constant 0.00208333344 : f32
    %33 = vector.broadcast %cst_14 : f32 to vector<8x128xf32>
    %34 = arith.addf %33, %32 : vector<8x128xf32>
    %35 = arith.mulf %27, %34 : vector<8x128xf32>
    %cst_15 = arith.constant -0.020833334 : f32
    %36 = vector.broadcast %cst_15 : f32 to vector<8x128xf32>
    %37 = arith.addf %36, %35 : vector<8x128xf32>
    %38 = arith.mulf %27, %37 : vector<8x128xf32>
    %cst_16 = arith.constant 2.500000e-01 : f32
    %39 = vector.broadcast %cst_16 : f32 to vector<8x128xf32>
    %40 = arith.addf %39, %38 : vector<8x128xf32>
    %41 = arith.mulf %26, %40 : vector<8x128xf32>
    %cst_17 = arith.constant 5.000000e-01 : f32
    %42 = vector.broadcast %cst_17 : f32 to vector<8x128xf32>
    %43 = arith.addf %42, %41 : vector<8x128xf32>
    %c0_18 = arith.constant 0 : index
    %c0_19 = arith.constant 0 : index
    %44 = vector.load %arg4[%c0_18, %c0_19] : memref<8x128xf32, #tpu.memory_space<vmem>>, vector<8x128xf32>
    tpu.vector_store %arg4[%c0_18, %c0_19], %43 {strides = array<i32>} : memref<8x128xf32, #tpu.memory_space<vmem>>, vector<8x128xf32>,
    return
  }
  func.func @transform_0(%arg0: i32, %arg1: i32) -> (i32, i32) {
    %c0_i32 = arith.constant 0 : i32
    %c0_i32_0 = arith.constant 0 : i32
    return %arg0, %c0_i32 : i32, i32
  }
  func.func @transform_1(%arg0: i32, %arg1: i32) -> (i32, i32) {
    %c0_i32 = arith.constant 0 : i32
    %c0_i32_0 = arith.constant 0 : i32
    return %c0_i32, %arg1 : i32, i32
  }
  func.func @transform_2(%arg0: i32, %arg1: i32) -> (i32, i32) {
    %c0_i32 = arith.constant 0 : i32
    return %arg0, %arg1 : i32, i32
  }
}

</mosaic_0001>

<bundles_post_ra>
// kernel: tpu_custom_call.1
= control target key start
LH: loop header
LB: loop body
LE: loop exit
PB: predicated region body
PF: predicated region fallthrough
CT: control target
= control target key end

     0   :  { %7 = vsyncpa [#allocation3], 0  ;;  %s1106_s0 = inlined_call_operand.vmem [shape: f32[16,8], index: 0, kind: input, shape index: {}]   ;;  %s1107_s1 = inlined_call_operand.vmem [shape: f32[8,128], index: 1, kind: input, shape index: {}]   ;;  %s1108_s2 = inlined_call_operand.hbm [shape: f32[16,16], index: 2, kind: output, shape index: {}]  }
   0x1   :  { %9 = vsyncpa [#allocation3 + $0x1], 0  ;;  %s985_s9 = smov 0   ;;  %s987_s10 = smov 0  }
   0x2   :  { %s989_s11 = smov 0   ;;  %s991_s12 = smov 0  }
   0x3   :  { %s993_s13 = smov 0   ;;  %s995_s14 = smov 0  }
   0x4 LB: > { %s760_s15 = sadd.s32 4294967295, %s965_s14   ;;  %s761_s16 = sadd.s32 4294967294, %s965_s14   ;;  %s965_s14 = sphi %s995_s14, %s15_s14   ;;  %s961_s13 = sphi %s993_s13, %s1115_s13   ;;  %s957_s12 = sphi %s991_s12, %s1114_s12   ;;  %s953_s11 = sphi %s989_s11, %s1113_s11   ;;  %s949_s10 = sphi %s987_s10, %s1112_s10   ;;  %s945_s9 = sphi %s985_s9, %s1111_s9  }
   0x5   : > { %s27_s17 = sadd.s32 1, %s961_s13  ;;  %s88_s18 = sadd.s32 1, %s953_s11 }
   0x6   : > { %p29_p0 = scmp.ge.s32.totalorder %s27_s17, 2  ;;  %p98_p1 = scmp.ne.s32.totalorder %s953_s11, %s949_s10 }
   0x7   : > { %p99_p2 = scmp.eq.s32.totalorder %s760_s15, 1  ;;  %p104_p3 = scmp.ne.s32.totalorder %s949_s10, %s945_s9 }
   0x8   : > { %s1117_s17 = smov (%p29_p0, %s27_s17), 0  ;;  %p105_p5 = scmp.eq.s32.totalorder %s761_s16, 1 }
   0x9   : > { %p1025_p4 = por %p99_p2, %p98_p1  ;;  %s83_s20 = ssub.s32 %s961_s13, %s1117_s17 }
   0xa   : > { %p765_p6 = scmp.ge.s32.totalorder %s965_s14, 1  ;;  %p86_p7 = scmp.eq.s32.totalorder %s83_s20, 0 }
   0xb   : > { %p1032_p8 = por %p105_p5, %p104_p3  ;;  %p137_p9 = scmp.lt.s32.totalorder %s965_s14, 3 }
   0xc   : > { %s1038_s22 = scalar_select %p86_p7, %s953_s11, %s88_s18  }
   0xd   : > { %p138_p10 = pnand %p765_p6, %p137_p9 }
   0xe   : > { %v171_v0 = vld [vmem:[%s1107_s1] sm:$0xff] (!%p138_p10)  ;;  %p162_p11 = scmp.lt.s32.totalorder (!%p138_p10), %s957_s12, 1  ;;  %v967_v1 = vmov (!%p138_p10), 0.0   ;;  %vm968_vm0 = vmmov (!%p138_p10), 0   ;;  %vm172_vm1 = vcmask (!%p138_p10), 64512   ;;  %s159_s30 = sand.u32 (!%p138_p10), 1, %s949_s10  }
   0xf   : > { %141 = sbr.rel (%p138_p10) target bundleno = 366 (0x16e), region = 28  ;;  %800 = vmatprep.subr.mxu0 (!%p138_p10), %v967_v1  ;;  %v177_v2 = vand.u32 (!%p138_p10), 4294901760, %v171_v0  ;;  %802 = vmatprep.mubr.msk.f32.mxu0 (!%p138_p10), %vm968_vm0, %v967_v1  ;;  %s766_s3 = sshll.u32 (!%p138_p10), %s159_s30, 3 }
  0x10   : > { %785 = vmatprep.subr.mxu1 (!%p138_p10), %v967_v1  ;;  %787 = vmatprep.mubr.msk.f32.mxu1 (!%p138_p10), %vm968_vm0, %v967_v1  ;;  %s770_s4 = sshll.u32 (!%p138_p10), %s957_s12, 7  ;;  %s161_s5 = scalar_lea.vmem (!%p138_p10), [#allocation2], %s766_s3 }
  0x11   : > { %v254_v3 = vsub.f32 (!%p138_p10), %v171_v0, %v177_v2  ;;  %801 = vmatpush3.msra.mxu0 (!%p138_p10), %v177_v2  ;;  %786 = vmatpush3.msra.mxu1 (!%p138_p10), %v177_v2  ;;  %s677_s6 = sshll.u32 (!%p138_p10), %s161_s5, 4  ;;  %s1059_s15 = scalar_lea.hbm (!%p138_p10), %s1108_s2, %s770_s4  ;;  %s1061_s6 = int_to_ptr.vmem [resolvable:$true] %s677_s6 }
  0x12   : > { %790 = vmatprep.subr.mxu1 (!%p138_p10), %v967_v1  ;;  %805 = vmatprep.subr.mxu0 (!%p138_p10), %v967_v1  ;;  %s663_s16 = scalar_lea.sflag (!%p138_p10), [#allocation3], %s159_s30  ;;  %s887_s18 = scalar_lea.vmem (!%p138_p10), %s1061_s6, 128 }
  0x13   : > { %v255_v6 = vand.u32 (!%p138_p10), 4294901760, %v254_v3  ;;  %p888_p12 = scmp.ne.s32.totalorder (!%p138_p10), %s1061_s6, %s887_s18 }
  0x15   : > { %v256_v9 = vsub.f32 (!%p138_p10), %v254_v3, %v255_v6  ;;  %p889_p13 = pnand (!%p138_p10), %p888_p12, %p1025_p4 }
  0x16   : > { %s163_s25 = scalar_select %p162_p11, %s957_s12, 1 }
  0x17   : > { %v257_v12 = vand.u32 4294901760, %v256_v9  ;;  %p890_p0 = pneg %p889_p13  ;;  %s969_s12 = smov [#allocation2]  }
  0x18   : > { %s767_s26 = sshll.u32 %s163_s25, 3  ;;  %s891_s20 = sshll.u32 %s969_s12, 4  ;;  %s892_s20 = int_to_ptr.vmem [resolvable:$false] %s891_s20 }
  0x19   : > { %s165_s29 = scalar_lea.vmem %s1106_s0, %s767_s26  ;;  %s893_s23 = scalar_lea.vmem %s892_s20, 256 }
  0x1a   : > { %v170_v4 = vld [vmem:[%s165_s29] sm:$0xff]  ;;  %p894_p1 = scmp.lt.s32.totalorder %s1061_s6, %s892_s20  ;;  %p895_p2 = scmp.lt.s32.totalorder %s893_s23, %s887_s18 }
  0x1b   : > { %v174_v5 = vsel %vm172_vm1, %v170_v4, 0 }
  0x1c   : > { %v242_v7 = vand.u32 4294901760, %v174_v5  ;;  %p896_p3 = por %p895_p2, %p894_p1 }
  0x1e   : > { %v243_v8 = vsub.f32 %v174_v5, %v242_v7  ;;  %p897_p5 = pnand %p896_p3, %p890_p0 }
  0x20   : > { %v244_v10 = vand.u32 4294901760, %v243_v8 }
  0x22   : > { %803 = vmatmul.mubr.f32.vlgmr.msra.gmra.mrb[0].mxu0 %v244_v10  ;;  %v245_v11 = vsub.f32 %v243_v8, %v244_v10 }
  0x23   : > { %806 = vmatpush3.msra.mxu0 %v255_v6  ;;  %807 = vmatprep.mubr.msk.f32.mxu0 %vm968_vm0, %v967_v1 }
  0x24   : > { %v246_v13 = vand.u32 4294901760, %v245_v11  ;;  %810 = vmatprep.subr.mxu0 %v967_v1 }
  0x26   : > { %788 = vmatmul.mubr.f32.vlgmr.msra.gmra.mrb[0].mxu1 %v246_v13 }
  0x27   : > { %791 = vmatpush3.msra.mxu1 %v257_v12  ;;  %792 = vmatprep.mubr.msk.f32.mxu1 %vm968_vm0, %v967_v1 }
  0x28   : > { %795 = vmatprep.subr.mxu1 %v967_v1 }
  0x2a   : > { %808 = vmatmul.mubr.f32.vlgmr.msra.gmra.mrb[0].mxu0 %v242_v7 }
  0x2b   : > { %811 = vmatpush3.msra.mxu0 %v177_v2  ;;  %812 = vmatprep.mubr.msk.f32.mxu0 %vm968_vm0, %v967_v1 }
  0x2e   : > { %793 = vmatmul.mubr.f32.vlgmr.msra.gmra.mrb[0].mxu1 %v242_v7 }
  0x2f   : > { %796 = vmatpush3.msra.mxu1 %v254_v3  ;;  %797 = vmatprep.mubr.msk.f32.mxu1 %vm968_vm0, %v967_v1 }
  0x32   : > { %813 = vmatmul.mubr.f32.vlgmr.msra.gmra.mrb[0].mxu0 %v242_v7 }
  0x36   : > { %798 = vmatmul.mubr.f32.vlgmr.msra.gmra.mrb[0].mxu1 %v243_v8 }
 0x105   : > { %v618_v14 = vpop.f32.mrb[0].mxu0 }
 0x106   : > { %v814_v15 = vpop.f32.mrb[1].mxu0 }
 0x109   : > { %v398_v16 = vpop.f32.mrb[0].mxu1 }
 0x10a   : > { %v815_v17 = vadd.f32 %v618_v14, %v398_v16  ;;  %v799_v18 = vpop.f32.mrb[1].mxu1 }
 0x10c   : > { %v622_v19 = vsub.f32 0.0, %v815_v17 }
 0x10e   : > { %v623_v20 = vmax.f32 %v622_v19, 1.0000001 }
 0x110   : > { %v768_v21 = vadd.f32 -1.0, %v623_v20  ;;  %v625_v22 = vadd.f32 1.0, %v623_v20 }
 0x112   : > { %v626_v23 = vmul.f32 %v768_v21, %v625_v22 }
 0x114   : > { %881 = vrsqrt.f32 %v626_v23  ;;  %vm629_vm2 = vcmp.eq.f32.partialorder %v626_v23, inf  ;;  %v632_v26 = vand.u32 2147483648, %v626_v23  ;;  %vm631_vm3 = vcmp.eq.f32.partialorder %v626_v23, 0.0 }
 0x11e   : > { %v882_v24 = vpop.eup %881 }
 0x11f   : > { %v628_v25 = vmul.f32 %v882_v24, %v626_v23 }
 0x121   : > { %v630_v27 = vsel %vm629_vm2, %v626_v23, %v628_v25 }
 0x122   : > { %v633_v28 = vsel %vm631_vm3, %v632_v26, %v630_v27 }
 0x123   : > { %v634_v29 = vadd.f32 %v768_v21, %v633_v28 }
 0x125   : > { %v635_v30 = vadd.f32 1.0, %v634_v29  ;;  %v638_v31 = vmul.f32 -0.5, %v634_v29  ;;  %v641_v33 = vand.u32 2147483647, %v634_v29 }
 0x127   : > { %883 = vlog2.f32 %v635_v30  ;;  %v639_v32 = vadd.f32 1.0, %v638_v31  ;;  %vm642_vm4 = vcmp.lt.f32.partialorder %v641_v33, 0.0004427343 }
 0x129   : > { %v640_v36 = vmul.f32 %v639_v32, %v634_v29 }
 0x131   : > { %v884_v34 = vpop.eup %883 }
 0x132   : > { %v637_v35 = vmul.f32 0.6931472, %v884_v34 }
 0x134   : > { %v643_v37 = vsel %vm642_vm4, %v640_v36, %v637_v35 }
 0x135   : > { %v644_v38 = vmul.f32 %v643_v37, %v643_v37 }
 0x137   : > { %v645_v39 = vsub.f32 2.0, %v644_v38 }
 0x139   : > { %v646_v40 = vmul.f32 0.5, %v645_v39 }
 0x13b   : > { %885 = vtanh.f32 %v646_v40 }
 0x145   : > { %v886_v41 = vpop.eup %885 }
 0x146   : > { %v648_v42 = vadd.f32 1.0, %v886_v41 }
 0x148   : > { %v649_v43 = vmul.f32 0.5, %v648_v42 }
 0x14a   : > { %v650_v44 = vmul.f32 %v649_v43, %v649_v43 }
 0x14c   : > { %v651_v45 = vmul.f32 2.1356922e-05, %v650_v44 }
 0x14e   : > { %v652_v46 = vadd.f32 -0.0002108135, %v651_v45 }
 0x150   : > { %v653_v47 = vmul.f32 %v652_v46, %v650_v44 }
 0x152   : > { %v654_v48 = vadd.f32 0.0020833334, %v653_v47 }
 0x154   : > { %v655_v49 = vmul.f32 %v654_v48, %v650_v44 }
 0x156   : > { %v656_v50 = vadd.f32 -0.020833334, %v655_v49 }
 0x158   : > { %v657_v51 = vmul.f32 %v656_v50, %v650_v44 }
 0x15a   : > { %v658_v52 = vadd.f32 0.25, %v657_v51 }
 0x15c   : > { %v659_v53 = vmul.f32 %v658_v52, %v649_v43 }
 0x15e   : > { %v660_v54 = vadd.f32 0.5, %v659_v53 }
 0x160   : > { %661 = vst [vmem:[%s161_s5] sm:$0xff] %v660_v54 }
 0x161   : > { %900 = shalt.err (!%p897_p5)
}
 0x162   : > { %s901_s24 = scalar_lea.hbm %s1059_s15, 128  ;;  %s905_s27 = scalar_lea.hbm %s1108_s2, 256 }
 0x163   : > { %p902_p6 = scmp.ne.s32.totalorder %s1059_s15, %s901_s24  ;;  %p906_p10 = scmp.lt.u32.totalorder %s1059_s15, %s1108_s2 }
 0x164   : > { %p907_p11 = scmp.lt.u32.totalorder %s905_s27, %s901_s24  ;;  %p909_p13 = scmp.lt.u32.totalorder %s901_s24, %s1059_s15 }
 0x165   : > { %p903_p7 = pnand %p902_p6, %p1025_p4 }
 0x166   : > { %p908_p12 = por %p907_p11, %p906_p10 }
 0x167   : > { %p904_p9 = pneg %p903_p7 }
 0x168   : > { %p910_p0 = por %p909_p13, %p908_p12 }
 0x16a   : > { %p911_p1 = pnand %p910_p0, %p904_p9 }
 0x16c   : > { %914 = shalt.err (!%p911_p1)
}
 0x16d   : > { %824 = dma.vmem_to_hbm [thread:$0]  (%p1025_p4), %s1061_s6, 128, %s1059_s15, %s663_s16  }
 0x16e PF: > { %p830_p2 = scmp.ge.s32.totalorder %s965_s14, 2  ;;  %s689_s30 = sand.u32 1, %s945_s9  }
 0x16f   : > { %s690_s3 = scalar_lea.sflag [#allocation3], %s689_s30 }
 0x170   : > { %p827_p3 = pnand %p830_p2, %p1032_p8 }
 0x172   : > { %940 = dma.done.wait (!%p827_p3), %s690_s3, 128  }
 0x173   : > { %942 = vsyncadd (!%p827_p3), %s690_s3, 4294967168  ;;  %s15_s14 = sadd.s32 1, %s965_s14   ;;  %s1111_s9 = smov %s949_s10 }
 0x174   : > { %p12_p5 = scmp.ge.s32.totalorder %s15_s14, 4   ;;  %s1112_s10 = smov %s953_s11 }
 0x175   : > { %s1113_s11 = smov %s1038_s22  ;;  %s1114_s12 = smov %s961_s13 }
 0x176   : > { %s1115_s13 = smov %s1117_s17  ;;  %14 = sbr.rel (!%p12_p5) target bundleno = 4 (0x4), region = 66 }
 0x17d   :  { %695 = vsyncpa [#allocation3], 1 }
 0x17e   :  { %697 = vsyncpa [#allocation3 + $0x1], 1 }

</bundles_post_ra>
